<compile_context>
chip_gen: v7x
topology: tpu7x:2x2x1
jax: 0.10.0
libtpu: 0.0.40
codegen_flags: <defaults>
</compile_context>

<pallas_src>
import functools

import jax
import jax.numpy as jnp
from jax import lax
from jax.experimental import pallas as pl
from jax.experimental.pallas import tpu as pltpu


_SLAB = 128          # lane width of the packed hidden state and of the output slab
_ATOM_REGION = 64    # output cols [0, 64) reserved for the dist atoms (n_atom <= 64)
_ACTION_START = 64   # output cols [64, 64+act_dim) hold the tanh action; q follows


# ---------------------------------------------------------------------------
# Kernel
# ---------------------------------------------------------------------------
def _fused_kernel(obs_ref, act_ref, w0o_ref, w0a_ref, w1_ref, w2_ref, misc_ref,
                  out_ref, *, n_atom, act_dim):
    obs = obs_ref[...]
    act = act_ref[...]
    # misc tile rows: 0=b0, 1=b1, 2=b2, 3=support (all padded to 128 lanes)
    b0 = misc_ref[0:1, :]
    b1 = misc_ref[1:2, :]
    b2 = misc_ref[2:3, :]
    support = misc_ref[3:4, :]

    # layer 0: actor & critic encoders fused into one 128-lane slab; the concat
    # [obs, action] is folded into two dots (actor half of w0_act is zero).
    h = jnp.dot(obs, w0o_ref[...], preferred_element_type=jnp.float32)
    h = h + jnp.dot(act, w0a_ref[...], preferred_element_type=jnp.float32) + b0
    h = jnp.maximum(h, 0.0)
    # layer 1: block-diagonal (128, 128)
    h = jnp.dot(h, w1_ref[...], preferred_element_type=jnp.float32) + b1
    h = jnp.maximum(h, 0.0)
    # layer 2: block-diagonal heads -> (tb, 128) pre-activation
    y = jnp.dot(h, w2_ref[...], preferred_element_type=jnp.float32) + b2

    col = lax.broadcasted_iota(jnp.int32, y.shape, 1)
    atom = col < n_atom
    # softmax over the real atom columns only (padded / actor columns masked out)
    logits = jnp.where(atom, y, -1e30)
    m = jnp.max(logits, axis=-1, keepdims=True)
    e = jnp.exp(logits - m)                                # exactly 0 off the atoms
    denom = jnp.sum(e, axis=-1, keepdims=True)
    dist = e * pl.reciprocal(denom, approx=False) + 1e-6   # torch.softmax(q,-1)+1e-6
    # q = sum(dist * support); support is 0 outside the real atoms
    q = jnp.sum(dist * support, axis=-1, keepdims=True)

    action_full = jnp.tanh(y)                              # actor cols are the action
    q_col = _ACTION_START + act_dim
    out_ref[...] = jnp.where(col < _ATOM_REGION, dist,
                   jnp.where(col < q_col, action_full,
                   jnp.where(col == q_col, q, 0.0)))


# ---------------------------------------------------------------------------
# Wrappers
# ---------------------------------------------------------------------------
def _batch_tile(B, tb):
    # Single-TC chips (v5e/v6e): big slabs amortize the ~0.35us/step grid overhead.
    # On v7x with B > ~256 pass tb ~= round_up(cdiv(B, 2), 8) so the "parallel" grid
    # has >= 2 steps and both TensorCores are used.
    if tb is None:
        tb = 1024
    tb = min(tb, B)
    if tb < B:
        tb = max(8, (tb // 8) * 8)     # (8,128) block constraint on the batch dim
    return tb


def _call_fused(obs, action, p, tb):
    B, F = obs.shape
    A = action.shape[1]
    tb = _batch_tile(B, tb)
    grid = (pl.cdiv(B, tb),)
    kernel = functools.partial(_fused_kernel, n_atom=p["n_atom"], act_dim=p["act_dim"])
    return pl.pallas_call(
        kernel,
        grid=grid,
        in_specs=[
            pl.BlockSpec((tb, F), lambda i: (i, 0)),
            pl.BlockSpec((tb, A), lambda i: (i, 0)),
            # whole-array weight blocks with constant index -> stay resident in VMEM
            pl.BlockSpec(p["w0_obs"].shape, lambda i: (0, 0)),
            pl.BlockSpec(p["w0_act"].shape, lambda i: (0, 0)),
            pl.BlockSpec(p["w1"].shape, lambda i: (0, 0)),
            pl.BlockSpec(p["w2"].shape, lambda i: (0, 0)),
            pl.BlockSpec(p["misc"].shape, lambda i: (0, 0)),
        ],
        out_specs=pl.BlockSpec((tb, _SLAB), lambda i: (i, 0)),
        out_shape=jax.ShapeDtypeStruct((B, _SLAB), jnp.float32),
        compiler_params=pltpu.CompilerParams(dimension_semantics=("parallel",)),
    )(obs, action, p["w0_obs"], p["w0_act"], p["w1"], p["w2"], p["misc"])


def qacdist_forward(obs, action, packed, *, tb=None):
    """Fused forward: compute_actor + compute_critic in a single pallas_call."""
    if action.ndim == 1:
        action = action[:, None]
    B = obs.shape[0]
    n_atom, act_dim = packed["n_atom"], packed["act_dim"]
    slab = _call_fused(obs, action, packed, tb)
    act_out = slab[:, _ACTION_START:_ACTION_START + act_dim]
    q = slab[:, _ACTION_START + act_dim:_ACTION_START + act_dim + 1]
    dist = slab[:, :n_atom].reshape(B, 1, n_atom)
    return {"action": act_out, "q_value": q, "distribution": dist}


def actor_forward(x, packed, *, tb=None):
    """compute_actor.  The critic columns of the shared 128-lane slab ride along for
    free on the MXU (its native width is >= 128) and are simply not sliced out."""
    B = x.shape[0]
    A_in = packed["w0_act"].shape[0]
    dummy_act = jnp.zeros((B, A_in), jnp.float32)
    slab = _call_fused(x, dummy_act, packed, tb)
    act_dim = packed["act_dim"]
    return {"action": slab[:, _ACTION_START:_ACTION_START + act_dim]}


def critic_forward(obs, action, packed, *, tb=None):
    """compute_critic (categorical). Returns {'q_value': (B,1), 'distribution': (B,1,n_atom)}."""
    if action.ndim == 1:
        action = action[:, None]
    B = obs.shape[0]
    n_atom, act_dim = packed["n_atom"], packed["act_dim"]
    slab = _call_fused(obs, action, packed, tb)
    q = slab[:, _ACTION_START + act_dim:_ACTION_START + act_dim + 1]
    dist = slab[:, :n_atom].reshape(B, 1, n_atom)
    return {"q_value": q, "distribution": dist}


# ---------------------------------------------------------------------------
# Deterministic parameter init (PyTorch nn.Linear default: U(-1/sqrt(fan_in), +))
# plus column-packing into the 128-lane fused layout.
# ---------------------------------------------------------------------------
def _linear_params(key, fan_in, fan_out):
    kw, kb = jax.random.split(key)
    bound = 1.0 / jnp.sqrt(float(fan_in))
    w = jax.random.uniform(kw, (fan_in, fan_out), jnp.float32, -bound, bound)
    b = jax.random.uniform(kb, (fan_out,), jnp.float32, -bound, bound)
    return w, b


def make_params(key, obs_shape, action_shape, actor_hidden, critic_hidden,
                n_atom, v_min, v_max):
    assert actor_hidden + critic_hidden <= _SLAB
    assert n_atom <= _ATOM_REGION
    assert action_shape + 1 <= _SLAB - _ACTION_START
    keys = jax.random.split(key, 6)
    # actor: Linear(obs, Ha) / Linear(Ha, Ha) / Linear(Ha, act)
    aw0, ab0 = _linear_params(keys[0], obs_shape, actor_hidden)
    aw1, ab1 = _linear_params(keys[1], actor_hidden, actor_hidden)
    aw2, ab2 = _linear_params(keys[2], actor_hidden, action_shape)
    # critic: Linear(obs+act, Hc) / Linear(Hc, Hc) / Linear(Hc, 1*n_atom)
    cw0, cb0 = _linear_params(keys[3], obs_shape + action_shape, critic_hidden)
    cw1, cb1 = _linear_params(keys[4], critic_hidden, critic_hidden)
    cw2, cb2 = _linear_params(keys[5], critic_hidden, n_atom)
    support = jnp.linspace(v_min, v_max, n_atom, dtype=jnp.float32)

    HA, HC, F, A = actor_hidden, critic_hidden, obs_shape, action_shape

    # Column-pack actor+critic into 128-lane layers.  Hidden slab: actor cols [0,HA),
    # critic cols [HA,HA+HC).  Output slab: atoms [0,n_atom), action [64,64+A), q next.
    w0_obs = jnp.zeros((F, _SLAB), jnp.float32)
    w0_obs = w0_obs.at[:, :HA].set(aw0).at[:, HA:HA + HC].set(cw0[:F])
    w0_act = jnp.zeros((A, _SLAB), jnp.float32)
    w0_act = w0_act.at[:, HA:HA + HC].set(cw0[F:])
    w1 = jnp.zeros((_SLAB, _SLAB), jnp.float32)
    w1 = w1.at[:HA, :HA].set(aw1).at[HA:HA + HC, HA:HA + HC].set(cw1)
    w2 = jnp.zeros((_SLAB, _SLAB), jnp.float32)
    w2 = w2.at[:HA, _ACTION_START:_ACTION_START + A].set(aw2)
    w2 = w2.at[HA:HA + HC, :n_atom].set(cw2)

    b0p = jnp.zeros((_SLAB,), jnp.float32).at[:HA].set(ab0).at[HA:HA + HC].set(cb0)
    b1p = jnp.zeros((_SLAB,), jnp.float32).at[:HA].set(ab1).at[HA:HA + HC].set(cb1)
    b2p = jnp.zeros((_SLAB,), jnp.float32).at[:n_atom].set(cb2)
    b2p = b2p.at[_ACTION_START:_ACTION_START + A].set(ab2)
    sup = jnp.zeros((_SLAB,), jnp.float32).at[:n_atom].set(support)
    misc = jnp.zeros((8, _SLAB), jnp.float32)
    misc = misc.at[0].set(b0p).at[1].set(b1p).at[2].set(b2p).at[3].set(sup)

    packed = {"w0_obs": w0_obs, "w0_act": w0_act, "w1": w1, "w2": w2, "misc": misc,
              "n_atom": int(n_atom), "act_dim": int(action_shape)}
    raw_actor = (aw0, ab0, aw1, ab1, aw2, ab2)
    raw_critic = (cw0, cb0, cw1, cb1, cw2, cb2)
    return packed, raw_actor, raw_critic, support


# ---------------------------------------------------------------------------
# Pure-JAX reference for correctness check
# ---------------------------------------------------------------------------
def _ref_actor(x, p):
    w0, b0, w1, b1, w2, b2 = p
    h = jnp.maximum(x @ w0 + b0, 0.0)
    h = jnp.maximum(h @ w1 + b1, 0.0)
    return jnp.tanh(h @ w2 + b2)


def _ref_critic(obs, act, p, support):
    w0, b0, w1, b1, w2, b2 = p
    x = jnp.concatenate([obs, act], axis=1)
    h = jnp.maximum(x @ w0 + b0, 0.0)
    h = jnp.maximum(h @ w1 + b1, 0.0)
    logits = h @ w2 + b2
    e = jnp.exp(logits - jnp.max(logits, axis=-1, keepdims=True))
    dist = e / jnp.sum(e, axis=-1, keepdims=True) + 1e-6
    q = jnp.sum(dist * support[None, :], axis=-1, keepdims=True)
    return q, dist.reshape(dist.shape[0], 1, dist.shape[1])


if __name__ == "__main__":
    B = 16
    OBS, ACT = 16, 4
    HA, HC = 64, 64
    N_ATOM, V_MIN, V_MAX = 51, -10.0, 10.0

    key = jax.random.PRNGKey(0)
    kx, ka, kp = jax.random.split(key, 3)
    obs = jax.random.normal(kx, (B, OBS), jnp.float32)
    action = jax.random.normal(ka, (B, ACT), jnp.float32)

    packed, raw_actor, raw_critic, support = make_params(
        kp, OBS, ACT, HA, HC, N_ATOM, V_MIN, V_MAX)

    # --- fused forward (single pallas_call: actor + critic) -----------------
    fused = qacdist_forward(obs, action, packed)
    jax.block_until_ready(fused["q_value"])
    assert fused["action"].shape == (B, ACT)
    assert fused["q_value"].shape == (B, 1)
    assert fused["distribution"].shape == (B, 1, N_ATOM)

    # --- separate mode calls (module's compute_actor / compute_critic) ------
    actor_out = actor_forward(obs, packed)
    critic_out = critic_forward(obs, action, packed)
    jax.block_until_ready(critic_out["q_value"])
    assert actor_out["action"].shape == (B, ACT)
    assert critic_out["q_value"].shape == (B, 1)
    assert critic_out["distribution"].shape == (B, 1, N_ATOM)

    # --- correctness vs pure-JAX reference ----------------------------------
    ref_act = _ref_actor(obs, raw_actor)
    ref_q, ref_dist = _ref_critic(obs, action, raw_critic, support)

    assert jnp.allclose(fused["action"], ref_act, atol=1e-5, rtol=1e-5)
    assert jnp.allclose(fused["q_value"], ref_q, atol=1e-5, rtol=1e-5)
    assert jnp.allclose(fused["distribution"], ref_dist, atol=1e-5, rtol=1e-5)

    assert jnp.allclose(actor_out["action"], ref_act, atol=1e-5, rtol=1e-5)
    assert jnp.allclose(critic_out["q_value"], ref_q, atol=1e-5, rtol=1e-5)
    assert jnp.allclose(critic_out["distribution"], ref_dist, atol=1e-5, rtol=1e-5)

    print("KERNEL_OK")
</pallas_src>

<mosaic_0001>
module attributes {stable_mosaic.version = 11 : i64} {
  func.func @_fused_kernel(%arg0: i32, %arg1: memref<16x16xf32, #tpu.memory_space<vmem>>, %arg2: memref<16x4xf32, #tpu.memory_space<vmem>>, %arg3: memref<16x128xf32, #tpu.memory_space<vmem>>, %arg4: memref<4x128xf32, #tpu.memory_space<vmem>>, %arg5: memref<128x128xf32, #tpu.memory_space<vmem>>, %arg6: memref<128x128xf32, #tpu.memory_space<vmem>>, %arg7: memref<8x128xf32, #tpu.memory_space<vmem>>, %arg8: memref<16x128xf32, #tpu.memory_space<vmem>>) attributes {dimension_semantics = [#tpu.dimension_semantics<parallel>], iteration_bounds = array<i64: 1>, scalar_prefetch = 0 : i64, scratch_operands = 0 : i64, tpu.core_type = #tpu.core_type<tc>, window_params = [{transform_indices = @transform_0, window_bounds = array<i64: 16, 16>}, {transform_indices = @transform_1, window_bounds = array<i64: 16, 4>}, {pipeline_mode = #tpu.pipeline_mode<synchronous>, transform_indices = @transform_2, window_bounds = array<i64: 16, 128>}, {pipeline_mode = #tpu.pipeline_mode<synchronous>, transform_indices = @transform_3, window_bounds = array<i64: 4, 128>}, {pipeline_mode = #tpu.pipeline_mode<synchronous>, transform_indices = @transform_4, window_bounds = array<i64: 128, 128>}, {pipeline_mode = #tpu.pipeline_mode<synchronous>, transform_indices = @transform_5, window_bounds = array<i64: 128, 128>}, {pipeline_mode = #tpu.pipeline_mode<synchronous>, transform_indices = @transform_6, window_bounds = array<i64: 8, 128>}, {transform_indices = @transform_7, window_bounds = array<i64: 16, 128>}]} {
    %c0 = arith.constant 0 : index
    %c0_0 = arith.constant 0 : index
    %0 = vector.load %arg1[%c0, %c0_0] : memref<16x16xf32, #tpu.memory_space<vmem>>, vector<16x16xf32>
    %c0_1 = arith.constant 0 : index
    %c0_2 = arith.constant 0 : index
    %1 = vector.load %arg2[%c0_1, %c0_2] : memref<16x4xf32, #tpu.memory_space<vmem>>, vector<16x4xf32>
    %c0_3 = arith.constant 0 : index
    %c0_4 = arith.constant 0 : index
    %2 = vector.load %arg7[%c0_3, %c0_4] : memref<8x128xf32, #tpu.memory_space<vmem>>, vector<1x128xf32>
    %c1 = arith.constant 1 : index
    %c0_5 = arith.constant 0 : index
    %3 = vector.load %arg7[%c1, %c0_5] : memref<8x128xf32, #tpu.memory_space<vmem>>, vector<1x128xf32>
    %c2 = arith.constant 2 : index
    %c0_6 = arith.constant 0 : index
    %4 = vector.load %arg7[%c2, %c0_6] : memref<8x128xf32, #tpu.memory_space<vmem>>, vector<1x128xf32>
    %c3 = arith.constant 3 : index
    %c0_7 = arith.constant 0 : index
    %5 = vector.load %arg7[%c3, %c0_7] : memref<8x128xf32, #tpu.memory_space<vmem>>, vector<1x128xf32>
    %c0_8 = arith.constant 0 : index
    %c0_9 = arith.constant 0 : index
    %6 = vector.load %arg3[%c0_8, %c0_9] : memref<16x128xf32, #tpu.memory_space<vmem>>, vector<16x128xf32>
    %cst = arith.constant dense<0.000000e+00> : vector<16x128xf32>
    %7 = tpu.matmul %0, %6, %cst {dimension_numbers = #tpu.dot_dimension_numbers<[1], [0], [0], [1], [0, 0, 1, 1], [], []>} : vector<16x16xf32>, vector<16x128xf32>, vector<16x128xf32> -> vector<16x128xf32>
    %c0_10 = arith.constant 0 : index
    %c0_11 = arith.constant 0 : index
    %8 = vector.load %arg4[%c0_10, %c0_11] : memref<4x128xf32, #tpu.memory_space<vmem>>, vector<4x128xf32>
    %cst_12 = arith.constant dense<0.000000e+00> : vector<16x128xf32>
    %9 = tpu.matmul %1, %8, %cst_12 {dimension_numbers = #tpu.dot_dimension_numbers<[1], [0], [0], [1], [0, 0, 1, 1], [], []>} : vector<16x4xf32>, vector<4x128xf32>, vector<16x128xf32> -> vector<16x128xf32>
    %10 = arith.addf %7, %9 : vector<16x128xf32>
    %11 = vector.broadcast %2 : vector<1x128xf32> to vector<16x128xf32>
    %12 = arith.addf %10, %11 : vector<16x128xf32>
    %cst_13 = arith.constant 0.000000e+00 : f32
    %13 = vector.broadcast %cst_13 : f32 to vector<16x128xf32>
    %14 = arith.maximumf %12, %13 : vector<16x128xf32>
    %c0_14 = arith.constant 0 : index
    %c0_15 = arith.constant 0 : index
    %15 = vector.load %arg5[%c0_14, %c0_15] : memref<128x128xf32, #tpu.memory_space<vmem>>, vector<128x128xf32>
    %cst_16 = arith.constant dense<0.000000e+00> : vector<16x128xf32>
    %16 = tpu.matmul %14, %15, %cst_16 {dimension_numbers = #tpu.dot_dimension_numbers<[1], [0], [0], [1], [0, 0, 1, 1], [], []>} : vector<16x128xf32>, vector<128x128xf32>, vector<16x128xf32> -> vector<16x128xf32>
    %17 = vector.broadcast %3 : vector<1x128xf32> to vector<16x128xf32>
    %18 = arith.addf %16, %17 : vector<16x128xf32>
    %cst_17 = arith.constant 0.000000e+00 : f32
    %19 = vector.broadcast %cst_17 : f32 to vector<16x128xf32>
    %20 = arith.maximumf %18, %19 : vector<16x128xf32>
    %c0_18 = arith.constant 0 : index
    %c0_19 = arith.constant 0 : index
    %21 = vector.load %arg6[%c0_18, %c0_19] : memref<128x128xf32, #tpu.memory_space<vmem>>, vector<128x128xf32>
    %cst_20 = arith.constant dense<0.000000e+00> : vector<16x128xf32>
    %22 = tpu.matmul %20, %21, %cst_20 {dimension_numbers = #tpu.dot_dimension_numbers<[1], [0], [0], [1], [0, 0, 1, 1], [], []>} : vector<16x128xf32>, vector<128x128xf32>, vector<16x128xf32> -> vector<16x128xf32>
    %23 = vector.broadcast %4 : vector<1x128xf32> to vector<16x128xf32>
    %24 = arith.addf %22, %23 : vector<16x128xf32>
    %25 = tpu.iota {dimensions = array<i32: 1>} : vector<16x128xi32>
    %c51_i32 = arith.constant 51 : i32
    %26 = vector.broadcast %c51_i32 : i32 to vector<16x128xi32>
    %27 = arith.cmpi slt, %25, %26 : vector<16x128xi32>
    %cst_21 = arith.constant -1.000000e+30 : f32
    %28 = vector.broadcast %cst_21 : f32 to vector<16x128xf32>
    %29 = arith.select %27, %24, %28 : vector<16x128xi1>, vector<16x128xf32>
    %cst_22 = arith.constant dense<0xFF800000> : vector<16xf32>
    %30 = vector.multi_reduction <maximumf>, %29, %cst_22 [1] : vector<16x128xf32> to vector<16xf32>
    %31 = vector.shape_cast %30 : vector<16xf32> to vector<16x1xf32>
    %32 = vector.broadcast %31 : vector<16x1xf32> to vector<16x128xf32>
    %33 = arith.subf %29, %32 : vector<16x128xf32>
    %34 = math.exp %33 : vector<16x128xf32>
    %cst_23 = arith.constant dense<0.000000e+00> : vector<16xf32>
    %35 = vector.multi_reduction <add>, %34, %cst_23 [1] : vector<16x128xf32> to vector<16xf32>
    %36 = vector.shape_cast %35 : vector<16xf32> to vector<16x1xf32>
    %37 = tpu.reciprocal %36 : vector<16x1xf32> -> vector<16x1xf32>
    %38 = vector.broadcast %37 : vector<16x1xf32> to vector<16x128xf32>
    %39 = arith.mulf %34, %38 : vector<16x128xf32>
    %cst_24 = arith.constant 9.99999997E-7 : f32
    %40 = vector.broadcast %cst_24 : f32 to vector<16x128xf32>
    %41 = arith.addf %39, %40 : vector<16x128xf32>
    %42 = vector.broadcast %5 : vector<1x128xf32> to vector<16x128xf32>
    %43 = arith.mulf %41, %42 : vector<16x128xf32>
    %cst_25 = arith.constant dense<0.000000e+00> : vector<16xf32>
    %44 = vector.multi_reduction <add>, %43, %cst_25 [1] : vector<16x128xf32> to vector<16xf32>
    %45 = vector.shape_cast %44 : vector<16xf32> to vector<16x1xf32>
    %46 = math.tanh %24 : vector<16x128xf32>
    %c64_i32 = arith.constant 64 : i32
    %47 = vector.broadcast %c64_i32 : i32 to vector<16x128xi32>
    %48 = arith.cmpi slt, %25, %47 : vector<16x128xi32>
    %c68_i32 = arith.constant 68 : i32
    %49 = vector.broadcast %c68_i32 : i32 to vector<16x128xi32>
    %50 = arith.cmpi slt, %25, %49 : vector<16x128xi32>
    %c68_i32_26 = arith.constant 68 : i32
    %51 = vector.broadcast %c68_i32_26 : i32 to vector<16x128xi32>
    %52 = arith.cmpi eq, %25, %51 : vector<16x128xi32>
    %cst_27 = arith.constant 0.000000e+00 : f32
    %53 = vector.shape_cast %45 : vector<16x1xf32> to vector<16x1xf32>
    %54 = vector.broadcast %53 : vector<16x1xf32> to vector<16x128xf32>
    %55 = vector.broadcast %cst_27 : f32 to vector<16x128xf32>
    %56 = arith.select %52, %54, %55 : vector<16x128xi1>, vector<16x128xf32>
    %57 = arith.select %50, %46, %56 : vector<16x128xi1>, vector<16x128xf32>
    %58 = arith.select %48, %41, %57 : vector<16x128xi1>, vector<16x128xf32>
    %c0_28 = arith.constant 0 : index
    %c0_29 = arith.constant 0 : index
    %59 = vector.load %arg8[%c0_28, %c0_29] : memref<16x128xf32, #tpu.memory_space<vmem>>, vector<16x128xf32>
    tpu.vector_store %arg8[%c0_28, %c0_29], %58 {strides = array<i32>} : memref<16x128xf32, #tpu.memory_space<vmem>>, vector<16x128xf32>,
    return
  }
  func.func @transform_0(%arg0: i32) -> (i32, i32) {
    %c0_i32 = arith.constant 0 : i32
    %c0_i32_0 = arith.constant 0 : i32
    return %arg0, %c0_i32 : i32, i32
  }
  func.func @transform_1(%arg0: i32) -> (i32, i32) {
    %c0_i32 = arith.constant 0 : i32
    %c0_i32_0 = arith.constant 0 : i32
    return %arg0, %c0_i32 : i32, i32
  }
  func.func @transform_2(%arg0: i32) -> (i32, i32) {
    %c0_i32 = arith.constant 0 : i32
    %c0_i32_0 = arith.constant 0 : i32
    %c0_i32_1 = arith.constant 0 : i32
    return %c0_i32, %c0_i32_0 : i32, i32
  }
  func.func @transform_3(%arg0: i32) -> (i32, i32) {
    %c0_i32 = arith.constant 0 : i32
    %c0_i32_0 = arith.constant 0 : i32
    %c0_i32_1 = arith.constant 0 : i32
    return %c0_i32, %c0_i32_0 : i32, i32
  }
  func.func @transform_4(%arg0: i32) -> (i32, i32) {
    %c0_i32 = arith.constant 0 : i32
    %c0_i32_0 = arith.constant 0 : i32
    %c0_i32_1 = arith.constant 0 : i32
    return %c0_i32, %c0_i32_0 : i32, i32
  }
  func.func @transform_5(%arg0: i32) -> (i32, i32) {
    %c0_i32 = arith.constant 0 : i32
    %c0_i32_0 = arith.constant 0 : i32
    %c0_i32_1 = arith.constant 0 : i32
    return %c0_i32, %c0_i32_0 : i32, i32
  }
  func.func @transform_6(%arg0: i32) -> (i32, i32) {
    %c0_i32 = arith.constant 0 : i32
    %c0_i32_0 = arith.constant 0 : i32
    %c0_i32_1 = arith.constant 0 : i32
    return %c0_i32, %c0_i32_0 : i32, i32
  }
  func.func @transform_7(%arg0: i32) -> (i32, i32) {
    %c0_i32 = arith.constant 0 : i32
    %c0_i32_0 = arith.constant 0 : i32
    return %arg0, %c0_i32 : i32, i32
  }
}

</mosaic_0001>

<bundles_post_ra>
// kernel: tpu_custom_call.1
= control target key start
LH: loop header
LB: loop body
LE: loop exit
PB: predicated region body
PF: predicated region fallthrough
CT: control target
= control target key end

     0   :  { %12 = vsyncpa [#allocation3], 0  ;;  %s971_s0 = inlined_call_operand.vmem [shape: f32[16,16], index: 0, kind: input, shape index: {}]   ;;  %s972_s1 = inlined_call_operand.vmem [shape: f32[16,4], index: 1, kind: input, shape index: {}]   ;;  %s973_s2 = inlined_call_operand.hbm [shape: f32[16,128], index: 2, kind: input, shape index: {}]   ;;  %s974_s3 = inlined_call_operand.vmem [shape: f32[4,128], index: 3, kind: input, shape index: {}]   ;;  %s975_s4 = inlined_call_operand.hbm [shape: f32[128,128], index: 4, kind: input, shape index: {}]   ;;  %s976_s5 = inlined_call_operand.hbm [shape: f32[128,128], index: 5, kind: input, shape index: {}]   ;;  %s977_s6 = inlined_call_operand.vmem [shape: f32[8,128], index: 6, kind: input, shape index: {}]   ;;  %s978_s7 = inlined_call_operand.hbm [shape: f32[16,128], index: 7, kind: output, shape index: {}]  }
   0x1   :  { %13 = vsyncpa [#allocation6], 0 }
   0x2   :  { %14 = vsyncpa [#allocation4], 0  ;;  %s829_s24 = smov [#allocation5]   ;;  %s830_s26 = smov [#allocation2]  }
   0x3   :  { %s38_s25 = sshll.u32 %s829_s24, 4  ;;  %s24_s27 = sshll.u32 %s830_s26, 4  ;;  %s39_s25 = int_to_ptr.vmem [resolvable:$true] %s38_s25  ;;  %s875_s27 = int_to_ptr.vmem [resolvable:$true] %s24_s27 }
   0x4   :  { %s735_s30 = scalar_lea.hbm %s975_s4, 2048 }
   0x5   :  { %p736_p0 = scmp.ne.s32.totalorder %s975_s4, %s735_s30  ;;  %p739_p1 = scmp.lt.u32.totalorder %s735_s30, %s975_s4 }
   0x7   :  { %p741_p2 = pnand %p739_p1, %p736_p0 }
   0x9   :  { %744 = shalt.err (!%p741_p2)
}
   0xa   :  { %s745_s12 = scalar_lea.vmem %s39_s25, 2048  ;;  %p750_p4 = scmp.lt.s32.totalorder %s39_s25, %s39_s25 }
   0xb   :  { %p746_p3 = scmp.ne.s32.totalorder %s39_s25, %s745_s12  ;;  %p751_p5 = scmp.lt.s32.totalorder %s745_s12, %s745_s12 }
   0xd   :  { %p752_p6 = por %p751_p5, %p750_p4 }
   0xf   :  { %p753_p7 = pnand %p752_p6, %p746_p3 }
  0x11   :  { %756 = shalt.err (!%p753_p7)
}
  0x12   :  { %s831_s13 = smov 128   ;;  %s832_s14 = smov 8  }
  0x13   :  { %44 = dma.hbm_to_vmem [thread:$0]  %s975_s4, 2048, %s39_s25, [#allocation6], %s831_s13, %s831_s13, %s832_s14  }
  0x14   :  { %s757_s19 = scalar_lea.hbm %s973_s2, 256 }
  0x15   :  { %p758_p8 = scmp.ne.s32.totalorder %s973_s2, %s757_s19  ;;  %p761_p9 = scmp.lt.u32.totalorder %s757_s19, %s973_s2 }
  0x17   :  { %p763_p10 = pnand %p761_p9, %p758_p8 }
  0x19   :  { %766 = shalt.err (!%p763_p10)
}
  0x1a   :  { %s767_s24 = scalar_lea.vmem %s875_s27, 256  ;;  %p772_p12 = scmp.lt.s32.totalorder %s875_s27, %s875_s27 }
  0x1b   :  { %p768_p11 = scmp.ne.s32.totalorder %s875_s27, %s767_s24  ;;  %p773_p13 = scmp.lt.s32.totalorder %s767_s24, %s767_s24 }
  0x1d   :  { %p774_p0 = por %p773_p13, %p772_p12 }
  0x1f   :  { %p775_p1 = pnand %p774_p0, %p768_p11 }
  0x21   :  { %778 = shalt.err (!%p775_p1)
}
  0x22   :  { %30 = dma.hbm_to_vmem [thread:$0]  %s973_s2, 256, %s875_s27, [#allocation3], %s831_s13, %s831_s13, %s832_s14  }
  0x23   :  { %s833_s26 = smov [#allocation7]   ;;  %s779_s8 = scalar_lea.hbm %s976_s5, 2048 }
  0x24   :  { %s50_s28 = sshll.u32 %s833_s26, 4  ;;  %p780_p2 = scmp.ne.s32.totalorder %s976_s5, %s779_s8  ;;  %s51_s28 = int_to_ptr.vmem [resolvable:$true] %s50_s28 }
  0x25   :  { %p783_p3 = scmp.lt.u32.totalorder %s779_s8, %s976_s5 }
  0x27   :  { %p785_p4 = pnand %p783_p3, %p780_p2 }
  0x29   :  { %788 = shalt.err (!%p785_p4)
}
  0x2a   :  { %s789_s15 = scalar_lea.vmem %s51_s28, 2048  ;;  %p794_p6 = scmp.lt.s32.totalorder %s51_s28, %s51_s28 }
  0x2b   :  { %p790_p5 = scmp.ne.s32.totalorder %s51_s28, %s789_s15  ;;  %p795_p7 = scmp.lt.s32.totalorder %s789_s15, %s789_s15 }
  0x2d   :  { %p796_p8 = por %p795_p7, %p794_p6 }
  0x2f   :  { %p797_p9 = pnand %p796_p8, %p790_p5 }
  0x31   :  { %800 = shalt.err (!%p797_p9)
}
  0x32   :  { %56 = dma.hbm_to_vmem [thread:$0]  %s976_s5, 2048, %s51_s28, [#allocation6], %s831_s13, %s831_s13, %s832_s14  }
  0x33   :  { %823 = dma.done.wait [#allocation3], 256  }
  0x34   :  { %824 = vsyncadd [#allocation3], 4294967040 }
  0x35   :  { %825 = dma.done.wait [#allocation6], 4096  }
  0x36   :  { %826 = vsyncadd [#allocation6], 4294963200  ;;  %vm86_vm0 = vcmask 1043456   ;;  %vm79_vm1 = vcmask 31744   ;;  %v76_v0 = vld [vmem:[#allocation2] sm:$0xff]  ;;  %v77_v1 = vld [vmem:[#allocation2 + $0x8] sm:$0xff] }
  0x37   :  { %v78_v2 = vld [vmem:[%s974_s3] sm:$0xf]  ;;  %v647_v3 = vpack.c.bf16 %v77_v1, %v76_v0  ;;  %v71_v5 = vld [vmem:[%s972_s1 + $0x8] sm:$0xff]  ;;  %vm165_vm2 = vcmask 130048   ;;  %v255_v7 = vld [vmem:[#allocation5] sm:$0xff]  ;;  %s834_s30 = smov [#allocation8]  }
  0x38   :  { %565 = vmatprep.subr.msk.mxu1 %vm86_vm0, %v78_v2  ;;  %v70_v4 = vld [vmem:[%s972_s1] sm:$0xff]  ;;  %v256_v8 = vld [vmem:[#allocation5 + $0x8] sm:$0xff]  ;;  %v258_v11 = vld [vmem:[#allocation5 + $0x18] sm:$0xff] }
  0x39   :  { %v68_v6 = vld [vmem:[%s971_s0] sm:$0xff]  ;;  %566 = vmatpush3.msk.msra.mxu1 %vm86_vm0, %v78_v2  ;;  %567 = vmatprep.mubr.msk.f32.mxu1 %vm79_vm1, %v70_v4  ;;  %v651_v9 = vpack.c.bf16 %v256_v8, %v255_v7  ;;  %v69_v12 = vld [vmem:[%s971_s0 + $0x8] sm:$0xff]  ;;  %v259_v14 = vld [vmem:[#allocation5 + $0x20] sm:$0xff] }
  0x3a   :  { %648 = vmatprep.subr.bf16.mxu0 %v647_v3  ;;  %568 = vmatmul.mubr.msk.f32.vlgmr.msra.gmra.mrb[0].mxu1 %vm79_vm1, %v71_v5  ;;  %v257_v10 = vld [vmem:[#allocation5 + $0x10] sm:$0xff]  ;;  %v260_v15 = vld [vmem:[#allocation5 + $0x28] sm:$0xff]  ;;  %v262_v18 = vld [vmem:[#allocation5 + $0x38] sm:$0xff] }
  0x3b   :  { %650 = vmatpush3.bf16.msra.mxu0 %v647_v3  ;;  %574 = vmatprep.mubr.msk.f32.mxu0 %vm165_vm2, %v68_v6  ;;  %v655_v13 = vpack.c.bf16 %v258_v11, %v257_v10  ;;  %v659_v16 = vpack.c.bf16 %v260_v15, %v259_v14  ;;  %v261_v17 = vld [vmem:[#allocation5 + $0x30] sm:$0xff]  ;;  %v263_v20 = vld [vmem:[#allocation5 + $0x40] sm:$0xff]  ;;  %v264_v21 = vld [vmem:[#allocation5 + $0x48] sm:$0xff]  ;;  %v447_v10 = vlaneseq }
  0x3c   :  { %652 = vmatprep.subr.bf16.mxu1 %v651_v9  ;;  %v663_v19 = vpack.c.bf16 %v262_v18, %v261_v17  ;;  %v667_v22 = vpack.c.bf16 %v264_v21, %v263_v20  ;;  %v265_v23 = vld [vmem:[#allocation5 + $0x50] sm:$0xff]  ;;  %v266_v24 = vld [vmem:[#allocation5 + $0x58] sm:$0xff]  ;;  %v267_v26 = vld [vmem:[#allocation5 + $0x60] sm:$0xff] }
  0x3d   :  { %654 = vmatpush3.bf16.msra.mxu1 %v651_v9  ;;  %v671_v25 = vpack.c.bf16 %v266_v24, %v265_v23  ;;  %v268_v27 = vld [vmem:[#allocation5 + $0x68] sm:$0xff]  ;;  %v269_v29 = vld [vmem:[#allocation5 + $0x70] sm:$0xff]  ;;  %v270_v30 = vld [vmem:[#allocation5 + $0x78] sm:$0xff]  ;;  %v448_v11 = vand.u32 127, %v447_v10 }
  0x3e   :  { %575 = vmatmul.mubr.msk.f32.vlgmr.msra.gmra.mrb[0].mxu0 %vm165_vm2, %v69_v12  ;;  %656 = vmatprep.subr.bf16.mxu1 %v655_v13  ;;  %v675_v28 = vpack.c.bf16 %v268_v27, %v267_v26  ;;  %v679_v31 = vpack.c.bf16 %v270_v30, %v269_v29  ;;  %v352_v32 = vld [vmem:[#allocation7] sm:$0xff]  ;;  %v353_v33 = vld [vmem:[#allocation7 + $0x8] sm:$0xff]  ;;  %v354_v34 = vld [vmem:[#allocation7 + $0x10] sm:$0xff] }
  0x3f   :  { %v683_v35 = vpack.c.bf16 %v353_v33, %v352_v32  ;;  %v355_v36 = vld [vmem:[#allocation7 + $0x18] sm:$0xff]  ;;  %v356_v38 = vld [vmem:[#allocation7 + $0x20] sm:$0xff]  ;;  %v357_v39 = vld [vmem:[#allocation7 + $0x28] sm:$0xff]  ;;  %vm449_vm3 = vcmp.lt.s32.totalorder %v448_v11, 51  ;;  %vm486_vm4 = vcmp.eq.s32.totalorder %v448_v11, 68  ;;  %vm485_vm5 = vcmp.lt.s32.totalorder %v448_v11, 68 }
  0x40   :  { %v687_v37 = vpack.c.bf16 %v355_v36, %v354_v34  ;;  %v691_v40 = vpack.c.bf16 %v357_v39, %v356_v38  ;;  %v358_v41 = vld [vmem:[#allocation7 + $0x30] sm:$0xff]  ;;  %v359_v42 = vld [vmem:[#allocation7 + $0x38] sm:$0xff]  ;;  %v360_v44 = vld [vmem:[#allocation7 + $0x40] sm:$0xff]  ;;  %vm484_vm6 = vcmp.lt.s32.totalorder %v448_v11, 64 }
  0x41   :  { %658 = vmatpush3.bf16.msra.mxu1 %v655_v13  ;;  %684 = vmatprep.subr.bf16.mxu0 %v683_v35  ;;  %v695_v43 = vpack.c.bf16 %v359_v42, %v358_v41  ;;  %v361_v45 = vld [vmem:[#allocation7 + $0x48] sm:$0xff]  ;;  %v362_v47 = vld [vmem:[#allocation7 + $0x50] sm:$0xff]  ;;  %v363_v48 = vld [vmem:[#allocation7 + $0x58] sm:$0xff] }
  0x42   :  { %660 = vmatprep.subr.bf16.mxu1 %v659_v16  ;;  %686 = vmatpush3.bf16.msra.mxu0 %v683_v35  ;;  %v699_v46 = vpack.c.bf16 %v361_v45, %v360_v44  ;;  %v703_v49 = vpack.c.bf16 %v363_v48, %v362_v47  ;;  %v364_v50 = vld [vmem:[#allocation7 + $0x60] sm:$0xff]  ;;  %v365_v51 = vld [vmem:[#allocation7 + $0x68] sm:$0xff]  ;;  %v518_v55 = vld [vmem:[%s977_s6] ss:$0 sm:$0xff] }
  0x43   :  { %688 = vmatprep.subr.bf16.mxu0 %v687_v37  ;;  %v707_v52 = vpack.c.bf16 %v365_v51, %v364_v50  ;;  %v366_v0 = vld [vmem:[#allocation7 + $0x70] sm:$0xff]  ;;  %v367_v1 = vld [vmem:[#allocation7 + $0x78] sm:$0xff] }
  0x44   :  { %v711_v2 = vpack.c.bf16 %v367_v1, %v366_v0  ;;  %v519_v3 = vld [vmem:[%s977_s6 + $0x1] ss:$0 sm:$0xff]  ;;  %v520_v12 = vld [vmem:[%s977_s6 + $0x2] ss:$0 sm:$0xff] }
  0x45   :  { %662 = vmatpush3.bf16.msra.mxu1 %v659_v16 }
  0x46   :  { %664 = vmatprep.subr.bf16.mxu1 %v663_v19  ;;  %690 = vmatpush3.bf16.msra.mxu0 %v687_v37 }
  0x47   :  { %692 = vmatprep.subr.bf16.mxu0 %v691_v40 }
  0x49   :  { %666 = vmatpush3.bf16.msra.mxu1 %v663_v19 }
  0x4a   :  { %668 = vmatprep.subr.bf16.mxu1 %v667_v22  ;;  %694 = vmatpush3.bf16.msra.mxu0 %v691_v40 }
  0x4b   :  { %696 = vmatprep.subr.bf16.mxu0 %v695_v43 }
  0x4d   :  { %670 = vmatpush3.bf16.msra.mxu1 %v667_v22 }
  0x4e   :  { %672 = vmatprep.subr.bf16.mxu1 %v671_v25  ;;  %698 = vmatpush3.bf16.msra.mxu0 %v695_v43 }
  0x4f   :  { %700 = vmatprep.subr.bf16.mxu0 %v699_v46 }
  0x51   :  { %674 = vmatpush3.bf16.msra.mxu1 %v671_v25 }
  0x52   :  { %676 = vmatprep.subr.bf16.mxu1 %v675_v28  ;;  %702 = vmatpush3.bf16.msra.mxu0 %v699_v46 }
  0x53   :  { %704 = vmatprep.subr.bf16.mxu0 %v703_v49 }
  0x55   :  { %678 = vmatpush3.bf16.msra.mxu1 %v675_v28 }
  0x56   :  { %680 = vmatprep.subr.bf16.mxu1 %v679_v31  ;;  %706 = vmatpush3.bf16.msra.mxu0 %v703_v49 }
  0x57   :  { %708 = vmatprep.subr.bf16.mxu0 %v707_v52 }
  0x59   :  { %682 = vmatpush3.bf16.msra.mxu1 %v679_v31  ;;  %v521_v31 = vld [vmem:[%s977_s6 + $0x3] ss:$0 sm:$0xff]  ;;  %s500_s6 = sshll.u32 %s834_s30, 4  ;;  %s501_s6 = int_to_ptr.vmem [resolvable:$true] %s500_s6 }
  0x5a   :  { %710 = vmatpush3.bf16.msra.mxu0 %v707_v52  ;;  %s801_s8 = scalar_lea.vmem %s501_s6, 256  ;;  %p806_p11 = scmp.lt.s32.totalorder %s501_s6, %s501_s6 }
  0x5b   :  { %712 = vmatprep.subr.bf16.mxu0 %v711_v2  ;;  %p802_p10 = scmp.ne.s32.totalorder %s501_s6, %s801_s8  ;;  %p807_p12 = scmp.lt.s32.totalorder %s801_s8, %s801_s8 }
  0x5d   :  { %p808_p13 = por %p807_p12, %p806_p11 }
  0x5e   :  { %714 = vmatpush3.bf16.msra.mxu0 %v711_v2 }
  0x5f   :  { %p809_p0 = pnand %p808_p13, %p802_p10 }
 0x10d   :  { %v569_v53 = vpop.f32.mrb[0].mxu1 }
 0x10e   :  { %v156_v54 = vpop.f32.mrb[1].mxu1 }
 0x111   :  { %v576_v56 = vpop.f32.mrb[0].mxu0 }
 0x112   :  { %v244_v57 = vadd.f32 %v576_v56, %v569_v53  ;;  %v238_v58 = vpop.f32.mrb[1].mxu0 }
 0x113   :  { %v239_v59 = vadd.f32 %v238_v58, %v156_v54 }
 0x114   :  { %v252_v60 = vadd.f32 %v518_v55, %v244_v57 }
 0x115   :  { %v251_v61 = vadd.f32 %v518_v55, %v239_v59 }
 0x116   :  { %v254_v63 = vmax.f32 %v252_v60, 0.0 }
 0x117   :  { %v253_v62 = vmax.f32 %v251_v61, 0.0 }
 0x119   :  { %609 = vmatprep.mubr.f32.mxu1 %v253_v62 }
 0x11a   :  { %610 = vmatmul.mubr.f32.vlgmr.msra.gmra.mrb[2].mxu1 %v254_v63 }
 0x1ed   :  { %v611_v4 = vpop.f32.mrb[2].mxu1 }
 0x1ee   :  { %v347_v5 = vadd.f32 %v611_v4, %v519_v3  ;;  %v341_v6 = vpop.f32.mrb[3].mxu1 }
 0x1ef   :  { %v342_v7 = vadd.f32 %v519_v3, %v341_v6 }
 0x1f0   :  { %v351_v9 = vmax.f32 %v347_v5, 0.0 }
 0x1f1   :  { %v350_v8 = vmax.f32 %v342_v7, 0.0 }
 0x1f3   :  { %644 = vmatprep.mubr.f32.mxu0 %v350_v8 }
 0x1f4   :  { %645 = vmatmul.mubr.f32.vlgmr.msra.gmra.mrb[2].mxu0 %v351_v9 }
 0x2c7   :  { %v646_v13 = vpop.f32.mrb[2].mxu0 }
 0x2c8   :  { %v438_v14 = vpop.f32.mrb[3].mxu0  ;;  %v444_v16 = vadd.f32 %v646_v13, %v520_v12 }
 0x2c9   :  { %v439_v15 = vadd.f32 %v520_v12, %v438_v14 }
 0x2ca   :  { %v451_v18 = vsel %vm449_vm3, %v444_v16, -1e+30 }
 0x2cb   :  { %v450_v17 = vsel %vm449_vm3, %v439_v15, -1e+30 }
 0x2cc   :  { %452 = vmax.xlane.f32.xlu0 %v450_v17 }
 0x2d0   :  { %454 = vmax.xlane.f32.xlu0 %v451_v18 }
 0x359   :  { %v453_v19 = vpop.xlane.xlu0 %452 }
 0x35a   :  { %v456_v20 = vsub.f32 %v450_v17, %v453_v19 }
 0x35c   :  { %v458_v21 = vmul.f32 1.442695, %v456_v20 }
 0x35d   :  { %v455_v22 = vpop.xlane.xlu0 %454 }
 0x35e   :  { %723 = vpow2.f32 %v458_v21  ;;  %v457_v23 = vsub.f32 %v451_v18, %v455_v22 }
 0x360   :  { %v460_v24 = vmul.f32 1.442695, %v457_v23 }
 0x362   :  { %725 = vpow2.f32 %v460_v24 }
 0x368   :  { %v724_v25 = vpop.eup %723 }
 0x369   :  { %462 = vadd.xlane.f32.xlu1 %v724_v25 }
 0x36c   :  { %v726_v26 = vpop.eup %725 }
 0x36d   :  { %464 = vadd.xlane.f32.xlu1 %v726_v26 }
 0x3f6   :  { %v463_v27 = vpop.xlane.xlu1 %462 }
 0x3f7   :  { %727 = vrcp.f32 %v463_v27 }
 0x3fa   :  { %v465_v28 = vpop.xlane.xlu1 %464 }
 0x3fb   :  { %729 = vrcp.f32 %v465_v28 }
 0x3fc   :  { %731 = vtanh.f32 %v439_v15 }
 0x3fd   :  { %733 = vtanh.f32 %v444_v16 }
 0x401   :  { %v728_v29 = vpop.eup %727 }
 0x402   :  { %v468_v30 = vmul.f32 %v728_v29, %v724_v25 }
 0x404   :  { %v470_v32 = vadd.f32 1e-06, %v468_v30 }
 0x405   :  { %v730_v33 = vpop.eup %729 }
 0x406   :  { %v476_v34 = vmul.f32 %v521_v31, %v470_v32  ;;  %v469_v35 = vmul.f32 %v730_v33, %v726_v26  ;;  %v732_v39 = vpop.eup %731 }
 0x407   :  { %v734_v44 = vpop.eup %733 }
 0x408   :  { %478 = vadd.xlane.f32.xlu0 %v476_v34  ;;  %v471_v36 = vadd.f32 1e-06, %v469_v35 }
 0x40a   :  { %v477_v37 = vmul.f32 %v521_v31, %v471_v36 }
 0x40c   :  { %480 = vadd.xlane.f32.xlu1 %v477_v37 }
 0x495   :  { %v479_v38 = vpop.xlane.xlu0 %478 }
 0x496   :  { %v487_v40 = vsel %vm486_vm4, %v479_v38, 0.0 }
 0x497   :  { %v489_v41 = vsel %vm485_vm5, %v732_v39, %v487_v40 }
 0x498   :  { %v491_v42 = vsel %vm484_vm6, %v470_v32, %v489_v41 }
 0x499   :  { %v481_v43 = vpop.xlane.xlu1 %480  ;;  %493 = vst [vmem:[#allocation8] sm:$0xff] %v491_v42 }
 0x49a   :  { %v488_v45 = vsel %vm486_vm4, %v481_v43, 0.0 }
 0x49b   :  { %v490_v46 = vsel %vm485_vm5, %v734_v44, %v488_v45 }
 0x49c   :  { %v492_v47 = vsel %vm484_vm6, %v471_v36, %v490_v46 }
 0x49d   :  { %494 = vst [vmem:[#allocation8 + $0x8] sm:$0xff] %v492_v47 }
 0x49e   :  { %812 = shalt.err (!%p809_p0)
}
 0x49f   :  { %s813_s11 = scalar_lea.hbm %s978_s7, 256 }
 0x4a0   :  { %p814_p1 = scmp.ne.s32.totalorder %s978_s7, %s813_s11  ;;  %p817_p2 = scmp.lt.u32.totalorder %s813_s11, %s978_s7 }
 0x4a2   :  { %p819_p3 = pnand %p817_p2, %p814_p1 }
 0x4a4   :  { %822 = shalt.err (!%p819_p3)
}
 0x4a5   :  { %506 = dma.vmem_to_hbm [thread:$0]  %s501_s6, 256, %s978_s7, [#allocation4], %s831_s13, %s831_s13, %s832_s14  }
 0x4a6   :  { %827 = dma.done.wait [#allocation4], 256  }
 0x4a7   :  { %828 = vsyncadd [#allocation4], 4294967040 }
 0x4a8   :  { %510 = vsyncpa [#allocation3], 1 }
 0x4a9   :  { %511 = vsyncpa [#allocation6], 1 }
 0x4aa   :  { %512 = vsyncpa [#allocation4], 1 }

</bundles_post_ra>
